<compile_context>
chip_gen: v7x
topology: tpu7x:2x2x1
jax: 0.10.0
libtpu: 0.0.40
codegen_flags: <defaults>
</compile_context>

<pallas_src>
import jax
import jax.numpy as jnp
from jax.experimental import pallas as pl
from jax.experimental.pallas import tpu as pltpu

LANE = 128
SUBLANE = 8


def _round_up(n, m):
    return ((n + m - 1) // m) * m


def mlp_kernel(x_ref, w1_ref, b1_ref, w2_ref, b2_ref, w3_ref, b3_ref, o_ref):
    # x streams in as f32; downcast here (VPU has slack) instead of a wrapper pass.
    x = x_ref[...].astype(jnp.bfloat16)                                # (tile_b, in_dim)

    # feature1: Linear(in_dim, 512) -> Dropout(identity, eval) -> ReLU
    h1 = jnp.dot(x, w1_ref[...], preferred_element_type=jnp.float32) + b1_ref[...]
    h1 = jnp.maximum(h1, 0.0).astype(jnp.bfloat16)

    # feature2: Linear(512, 128pad) -> Dropout(identity) -> ReLU -> Linear(128pad, 128pad)
    h2 = jnp.dot(h1, w2_ref[...], preferred_element_type=jnp.float32) + b2_ref[...]
    h2 = jnp.maximum(h2, 0.0).astype(jnp.bfloat16)
    logits = jnp.dot(h2, w3_ref[...], preferred_element_type=jnp.float32) + b3_ref[...]

    # softmax over the class dim (pad classes carry -1e30 bias -> exp underflows to 0).
    # Exact normalization so rows sum to 1 to f32 precision.
    m = jnp.max(logits, axis=-1, keepdims=True)
    e = jnp.exp(logits - m)
    probs = e / jnp.sum(e, axis=-1, keepdims=True)                     # (tile_b, OUTP) f32

    # Lane-dense transposed store: classes on sublanes, batch on lanes.
    probs_t = probs.T                                                  # (OUTP, tile_b)
    o_ref[...] = probs_t[: o_ref.shape[0], :]


def _vmem_estimate(tile_b, in_dim, h1, h2p, outp, out_sub):
    x_blk = tile_b * in_dim * 4                           # f32 input block
    o_blk = out_sub * tile_b * 4                          # f32 transposed output block
    wts = (in_dim * h1 + h1 * h2p + h2p * outp) * 2       # resident bf16 weights
    bias = (h1 + h2p + outp) * 4
    live = tile_b * (h1 + h2p) * (4 + 2)                  # f32 + bf16 intermediates
    live += tile_b * outp * 4 * 2                         # logits/probs + transpose temp
    return 2 * (x_blk + o_blk) + 2 * (wts + bias) + live


def prepare_params(params):
    """One-time padding + bf16 casting of the raw f32 (in, out) weights.
    Hoisted out of the forward path (do this once, reuse across calls)."""
    w1, b1, w2, b2, w3, b3 = params
    in_dim, H1 = w1.shape
    H2 = w2.shape[1]
    out_dim = w3.shape[1]
    H2P = _round_up(H2, LANE)        # 64  -> 128 (zero pad; ReLU(0)=0)
    OUTP = _round_up(out_dim, LANE)  # 2   -> 128 (pad-class bias = -1e30)

    w2p = jnp.pad(w2, ((0, 0), (0, H2P - H2)))
    b2p = jnp.pad(b2.reshape(1, -1), ((0, 0), (0, H2P - H2)))
    w3p = jnp.pad(w3, ((0, H2P - H2), (0, OUTP - out_dim)))
    b3p = jnp.pad(b3.reshape(1, -1), ((0, 0), (0, OUTP - out_dim)),
                  constant_values=-1e30)   # pad classes -> ~zero softmax mass (f32 logits)

    return {
        "w1": w1.astype(jnp.bfloat16),
        "b1": b1.reshape(1, -1).astype(jnp.float32),
        "w2": w2p.astype(jnp.bfloat16),
        "b2": b2p.astype(jnp.float32),
        "w3": w3p.astype(jnp.bfloat16),
        "b3": b3p.astype(jnp.float32),
        "in_dim": in_dim, "H1": H1, "H2P": H2P, "OUTP": OUTP, "out_dim": out_dim,
    }


def mlp_normal_forward(x, prep, *, tile_b=1024, core_parallel=False):
    """x: (B, in_dim) f32.  prep: output of prepare_params().

    tile_b is a sweep parameter: ~1024-2048 on v7x (64 MiB VMEM), up to 4096 on
    v5e/v6e (128 MiB).  core_parallel=True uses pltpu.CORE_PARALLEL so both v7x
    TensorCores get batch shards (only applied when the grid has >= 2 steps)."""
    B, in_dim = x.shape
    assert in_dim == prep["in_dim"]
    H1, H2P, OUTP = prep["H1"], prep["H2P"], prep["OUTP"]
    out_dim = prep["out_dim"]
    OUT_SUB = _round_up(out_dim, SUBLANE)       # sublane-padded class dim (2 -> 8)

    # ---- batch tiling ----
    if B <= tile_b:
        tile_b = _round_up(max(B, 1), SUBLANE)  # single tile; blocks == full arrays
    B_pad = _round_up(B, tile_b)
    if B_pad != B:
        x = jnp.pad(x, ((0, B_pad - B), (0, 0)))
    x = x.astype(jnp.float32)                   # no-op if already f32; cast to bf16 in-kernel

    grid_steps = B_pad // tile_b
    vmem_limit = int(min(max(_vmem_estimate(tile_b, in_dim, H1, H2P, OUTP, OUT_SUB)
                             + (8 << 20), 16 << 20), 48 << 20))

    if core_parallel and grid_steps >= 2:
        semantics = (pltpu.CORE_PARALLEL,)
    else:
        semantics = ("parallel",)

    out_t = pl.pallas_call(
        mlp_kernel,
        out_shape=jax.ShapeDtypeStruct((OUT_SUB, B_pad), jnp.float32),
        grid=(grid_steps,),
        in_specs=[
            pl.BlockSpec((tile_b, in_dim), lambda i: (i, 0)),   # x: streams over B
            pl.BlockSpec((in_dim, H1), lambda i: (0, 0)),       # w1: resident
            pl.BlockSpec((1, H1), lambda i: (0, 0)),            # b1
            pl.BlockSpec((H1, H2P), lambda i: (0, 0)),          # w2
            pl.BlockSpec((1, H2P), lambda i: (0, 0)),           # b2
            pl.BlockSpec((H2P, OUTP), lambda i: (0, 0)),        # w3
            pl.BlockSpec((1, OUTP), lambda i: (0, 0)),          # b3
        ],
        # transposed, lane-dense output block: classes on sublanes, batch on lanes
        out_specs=pl.BlockSpec((OUT_SUB, tile_b), lambda i: (0, i)),
        compiler_params=pltpu.CompilerParams(
            dimension_semantics=semantics,
            vmem_limit_bytes=vmem_limit,
        ),
    )(x, prep["w1"], prep["b1"], prep["w2"], prep["b2"], prep["w3"], prep["b3"])

    return out_t[:out_dim, :B].T


def init_params(key, in_dim, out_dim=2):
    """PyTorch nn.Linear default init (uniform +/- 1/sqrt(fan_in)),
    weights stored as (in_features, out_features)."""
    def linear(k, fan_in, fan_out):
        kw, kb = jax.random.split(k)
        bound = 1.0 / (fan_in ** 0.5)
        w = jax.random.uniform(kw, (fan_in, fan_out), jnp.float32, -bound, bound)
        b = jax.random.uniform(kb, (fan_out,), jnp.float32, -bound, bound)
        return w, b

    k1, k2, k3 = jax.random.split(key, 3)
    w1, b1 = linear(k1, in_dim, 512)
    w2, b2 = linear(k2, 512, 64)
    w3, b3 = linear(k3, 64, out_dim)
    return (w1, b1, w2, b2, w3, b3)


if __name__ == "__main__":
    key = jax.random.PRNGKey(0)
    k_x, k_p = jax.random.split(key)

    B, in_dim, out_dim = 8, 32, 2
    x = jax.random.normal(k_x, (B, in_dim), jnp.float32)
    params = init_params(k_p, in_dim, out_dim)

    prep = prepare_params(params)          # one-time param prep (hoisted out of hot path)
    out = mlp_normal_forward(x, prep)
    jax.block_until_ready(out)

    # sanity check vs pure-JAX f32 reference (inference semantics);
    # tolerance loosened for bf16 matmul operands (intentional for MXU).
    w1, b1, w2, b2, w3, b3 = params
    h1 = jnp.maximum(x @ w1 + b1, 0.0)
    h2 = jnp.maximum(h1 @ w2 + b2, 0.0)
    ref = jax.nn.softmax(h2 @ w3 + b3, axis=-1)

    assert out.shape == (B, out_dim)
    assert jnp.allclose(jnp.sum(out, axis=-1), 1.0, atol=1e-3)
    assert jnp.allclose(out, ref, atol=3e-2, rtol=3e-2)

    print("KERNEL_OK")
</pallas_src>

<mosaic_0001>
module attributes {stable_mosaic.version = 11 : i64} {
  func.func @mlp_kernel(%arg0: i32, %arg1: memref<8x32xf32, #tpu.memory_space<vmem>>, %arg2: memref<32x512xbf16, #tpu.memory_space<vmem>>, %arg3: memref<1x512xf32, #tpu.memory_space<vmem>>, %arg4: memref<512x128xbf16, #tpu.memory_space<vmem>>, %arg5: memref<1x128xf32, #tpu.memory_space<vmem>>, %arg6: memref<128x128xbf16, #tpu.memory_space<vmem>>, %arg7: memref<1x128xf32, #tpu.memory_space<vmem>>, %arg8: memref<8x8xf32, #tpu.memory_space<vmem>>) attributes {dimension_semantics = [#tpu.dimension_semantics<parallel>], iteration_bounds = array<i64: 1>, scalar_prefetch = 0 : i64, scratch_operands = 0 : i64, tpu.core_type = #tpu.core_type<tc>, window_params = [{transform_indices = @transform_0, window_bounds = array<i64: 8, 32>}, {pipeline_mode = #tpu.pipeline_mode<synchronous>, transform_indices = @transform_1, window_bounds = array<i64: 32, 512>}, {pipeline_mode = #tpu.pipeline_mode<synchronous>, transform_indices = @transform_2, window_bounds = array<i64: 1, 512>}, {pipeline_mode = #tpu.pipeline_mode<synchronous>, transform_indices = @transform_3, window_bounds = array<i64: 512, 128>}, {pipeline_mode = #tpu.pipeline_mode<synchronous>, transform_indices = @transform_4, window_bounds = array<i64: 1, 128>}, {pipeline_mode = #tpu.pipeline_mode<synchronous>, transform_indices = @transform_5, window_bounds = array<i64: 128, 128>}, {pipeline_mode = #tpu.pipeline_mode<synchronous>, transform_indices = @transform_6, window_bounds = array<i64: 1, 128>}, {transform_indices = @transform_7, window_bounds = array<i64: 8, 8>}]} {
    %c0 = arith.constant 0 : index
    %c0_0 = arith.constant 0 : index
    %0 = vector.load %arg1[%c0, %c0_0] : memref<8x32xf32, #tpu.memory_space<vmem>>, vector<8x32xf32>
    %1 = arith.truncf %0 : vector<8x32xf32> to vector<8x32xbf16>
    %c0_1 = arith.constant 0 : index
    %c0_2 = arith.constant 0 : index
    %2 = vector.load %arg2[%c0_1, %c0_2] : memref<32x512xbf16, #tpu.memory_space<vmem>>, vector<32x512xbf16>
    %cst = arith.constant dense<0.000000e+00> : vector<8x512xf32>
    %3 = tpu.matmul %1, %2, %cst {dimension_numbers = #tpu.dot_dimension_numbers<[1], [0], [0], [1], [0, 0, 1, 1], [], []>} : vector<8x32xbf16>, vector<32x512xbf16>, vector<8x512xf32> -> vector<8x512xf32>
    %c0_3 = arith.constant 0 : index
    %c0_4 = arith.constant 0 : index
    %4 = vector.load %arg3[%c0_3, %c0_4] : memref<1x512xf32, #tpu.memory_space<vmem>>, vector<1x512xf32>
    %5 = vector.broadcast %4 : vector<1x512xf32> to vector<8x512xf32>
    %6 = arith.addf %3, %5 : vector<8x512xf32>
    %cst_5 = arith.constant 0.000000e+00 : f32
    %7 = vector.broadcast %cst_5 : f32 to vector<8x512xf32>
    %8 = arith.maximumf %6, %7 : vector<8x512xf32>
    %9 = arith.truncf %8 : vector<8x512xf32> to vector<8x512xbf16>
    %c0_6 = arith.constant 0 : index
    %c0_7 = arith.constant 0 : index
    %10 = vector.load %arg4[%c0_6, %c0_7] : memref<512x128xbf16, #tpu.memory_space<vmem>>, vector<512x128xbf16>
    %cst_8 = arith.constant dense<0.000000e+00> : vector<8x128xf32>
    %11 = tpu.matmul %9, %10, %cst_8 {dimension_numbers = #tpu.dot_dimension_numbers<[1], [0], [0], [1], [0, 0, 1, 1], [], []>} : vector<8x512xbf16>, vector<512x128xbf16>, vector<8x128xf32> -> vector<8x128xf32>
    %c0_9 = arith.constant 0 : index
    %c0_10 = arith.constant 0 : index
    %12 = vector.load %arg5[%c0_9, %c0_10] : memref<1x128xf32, #tpu.memory_space<vmem>>, vector<1x128xf32>
    %13 = vector.broadcast %12 : vector<1x128xf32> to vector<8x128xf32>
    %14 = arith.addf %11, %13 : vector<8x128xf32>
    %cst_11 = arith.constant 0.000000e+00 : f32
    %15 = vector.broadcast %cst_11 : f32 to vector<8x128xf32>
    %16 = arith.maximumf %14, %15 : vector<8x128xf32>
    %17 = arith.truncf %16 : vector<8x128xf32> to vector<8x128xbf16>
    %c0_12 = arith.constant 0 : index
    %c0_13 = arith.constant 0 : index
    %18 = vector.load %arg6[%c0_12, %c0_13] : memref<128x128xbf16, #tpu.memory_space<vmem>>, vector<128x128xbf16>
    %cst_14 = arith.constant dense<0.000000e+00> : vector<8x128xf32>
    %19 = tpu.matmul %17, %18, %cst_14 {dimension_numbers = #tpu.dot_dimension_numbers<[1], [0], [0], [1], [0, 0, 1, 1], [], []>} : vector<8x128xbf16>, vector<128x128xbf16>, vector<8x128xf32> -> vector<8x128xf32>
    %c0_15 = arith.constant 0 : index
    %c0_16 = arith.constant 0 : index
    %20 = vector.load %arg7[%c0_15, %c0_16] : memref<1x128xf32, #tpu.memory_space<vmem>>, vector<1x128xf32>
    %21 = vector.broadcast %20 : vector<1x128xf32> to vector<8x128xf32>
    %22 = arith.addf %19, %21 : vector<8x128xf32>
    %cst_17 = arith.constant dense<0xFF800000> : vector<8xf32>
    %23 = vector.multi_reduction <maximumf>, %22, %cst_17 [1] : vector<8x128xf32> to vector<8xf32>
    %24 = vector.shape_cast %23 : vector<8xf32> to vector<8x1xf32>
    %25 = vector.broadcast %24 : vector<8x1xf32> to vector<8x128xf32>
    %26 = arith.subf %22, %25 : vector<8x128xf32>
    %27 = math.exp %26 : vector<8x128xf32>
    %cst_18 = arith.constant dense<0.000000e+00> : vector<8xf32>
    %28 = vector.multi_reduction <add>, %27, %cst_18 [1] : vector<8x128xf32> to vector<8xf32>
    %29 = vector.shape_cast %28 : vector<8xf32> to vector<8x1xf32>
    %30 = vector.broadcast %29 : vector<8x1xf32> to vector<8x128xf32>
    %31 = arith.divf %27, %30 : vector<8x128xf32>
    %32 = tpu.transpose %31, [1, 0] : vector<8x128xf32> -> vector<128x8xf32>
    %33 = vector.extract_strided_slice %32 {offsets = [0, 0], sizes = [8, 8], strides = [1, 1]} : vector<128x8xf32> to vector<8x8xf32>
    %c0_19 = arith.constant 0 : index
    %c0_20 = arith.constant 0 : index
    %34 = vector.load %arg8[%c0_19, %c0_20] : memref<8x8xf32, #tpu.memory_space<vmem>>, vector<8x8xf32>
    tpu.vector_store %arg8[%c0_19, %c0_20], %33 {strides = array<i32>} : memref<8x8xf32, #tpu.memory_space<vmem>>, vector<8x8xf32>,
    return
  }
  func.func @transform_0(%arg0: i32) -> (i32, i32) {
    %c0_i32 = arith.constant 0 : i32
    %c0_i32_0 = arith.constant 0 : i32
    return %arg0, %c0_i32 : i32, i32
  }
  func.func @transform_1(%arg0: i32) -> (i32, i32) {
    %c0_i32 = arith.constant 0 : i32
    %c0_i32_0 = arith.constant 0 : i32
    %c0_i32_1 = arith.constant 0 : i32
    return %c0_i32, %c0_i32_0 : i32, i32
  }
  func.func @transform_2(%arg0: i32) -> (i32, i32) {
    %c0_i32 = arith.constant 0 : i32
    %c0_i32_0 = arith.constant 0 : i32
    %c0_i32_1 = arith.constant 0 : i32
    return %c0_i32, %c0_i32_0 : i32, i32
  }
  func.func @transform_3(%arg0: i32) -> (i32, i32) {
    %c0_i32 = arith.constant 0 : i32
    %c0_i32_0 = arith.constant 0 : i32
    %c0_i32_1 = arith.constant 0 : i32
    return %c0_i32, %c0_i32_0 : i32, i32
  }
  func.func @transform_4(%arg0: i32) -> (i32, i32) {
    %c0_i32 = arith.constant 0 : i32
    %c0_i32_0 = arith.constant 0 : i32
    %c0_i32_1 = arith.constant 0 : i32
    return %c0_i32, %c0_i32_0 : i32, i32
  }
  func.func @transform_5(%arg0: i32) -> (i32, i32) {
    %c0_i32 = arith.constant 0 : i32
    %c0_i32_0 = arith.constant 0 : i32
    %c0_i32_1 = arith.constant 0 : i32
    return %c0_i32, %c0_i32_0 : i32, i32
  }
  func.func @transform_6(%arg0: i32) -> (i32, i32) {
    %c0_i32 = arith.constant 0 : i32
    %c0_i32_0 = arith.constant 0 : i32
    %c0_i32_1 = arith.constant 0 : i32
    return %c0_i32, %c0_i32_0 : i32, i32
  }
  func.func @transform_7(%arg0: i32) -> (i32, i32) {
    %c0_i32 = arith.constant 0 : i32
    %c0_i32_0 = arith.constant 0 : i32
    return %c0_i32, %arg0 : i32, i32
  }
}

</mosaic_0001>

<bundles_post_ra>
// kernel: tpu_custom_call.1
= control target key start
LH: loop header
LB: loop body
LE: loop exit
PB: predicated region body
PF: predicated region fallthrough
CT: control target
= control target key end

     0   :  { %12 = vsyncpa [#allocation3], 0  ;;  %s1197_s0 = inlined_call_operand.hbm [shape: f32[8,32], index: 0, kind: input, shape index: {}]   ;;  %s1198_s1 = inlined_call_operand.hbm [shape: bf16[32,512], index: 1, kind: input, shape index: {}]   ;;  %s1199_s2 = inlined_call_operand.vmem [shape: f32[1,512], index: 2, kind: input, shape index: {}]   ;;  %s1200_s3 = inlined_call_operand.hbm [shape: bf16[512,128], index: 3, kind: input, shape index: {}]   ;;  %s1201_s4 = inlined_call_operand.vmem [shape: f32[1,128], index: 4, kind: input, shape index: {}]   ;;  %s1202_s5 = inlined_call_operand.hbm [shape: bf16[128,128], index: 5, kind: input, shape index: {}]   ;;  %s1203_s6 = inlined_call_operand.vmem [shape: f32[1,128], index: 6, kind: input, shape index: {}]   ;;  %s1204_s7 = inlined_call_operand.hbm [shape: f32[8,8], index: 7, kind: output, shape index: {}]  }
   0x1   :  { %13 = vsyncpa [#allocation6], 0 }
   0x2   :  { %14 = vsyncpa [#allocation9], 0 }
   0x3   :  { %15 = vsyncpa [#allocation4], 0  ;;  %s1074_s24 = smov [#allocation5]   ;;  %s956_s28 = scalar_lea.hbm %s1198_s1, 1024 }
   0x4   :  { %s31_s25 = sshll.u32 %s1074_s24, 4  ;;  %p957_p0 = scmp.ne.s32.totalorder %s1198_s1, %s956_s28  ;;  %s32_s25 = int_to_ptr.vmem [resolvable:$true] %s31_s25 }
   0x5   :  { %p960_p1 = scmp.lt.u32.totalorder %s956_s28, %s1198_s1 }
   0x7   :  { %p962_p2 = pnand %p960_p1, %p957_p0 }
   0x9   :  { %965 = shalt.err (!%p962_p2)
}
   0xa   :  { %s966_s10 = scalar_lea.vmem %s32_s25, 1024  ;;  %p971_p4 = scmp.lt.s32.totalorder %s32_s25, %s32_s25 }
   0xb   :  { %p967_p3 = scmp.ne.s32.totalorder %s32_s25, %s966_s10  ;;  %p972_p5 = scmp.lt.s32.totalorder %s966_s10, %s966_s10 }
   0xd   :  { %p973_p6 = por %p972_p5, %p971_p4 }
   0xf   :  { %p974_p7 = pnand %p973_p6, %p967_p3 }
  0x11   :  { %977 = shalt.err (!%p974_p7)
}
  0x12   :  { %s1075_s11 = smov 256   ;;  %s1076_s12 = smov 16  }
  0x13   :  { %37 = dma.hbm_to_vmem [thread:$0]  %s1198_s1, 1024, %s32_s25, [#allocation6], %s1075_s11, %s1075_s11, %s1076_s12  }
  0x14   :  { %s1077_s15 = smov [#allocation2]   ;;  %s1078_s17 = smov [#allocation7]  }
  0x15   :  { %s22_s16 = sshll.u32 %s1077_s15, 4  ;;  %s45_s18 = sshll.u32 %s1078_s17, 4  ;;  %s23_s16 = int_to_ptr.vmem [resolvable:$true] %s22_s16  ;;  %s46_s18 = int_to_ptr.vmem [resolvable:$true] %s45_s18 }
  0x16   :  { %s978_s21 = scalar_lea.hbm %s1197_s0, 128 }
  0x17   :  { %p979_p8 = scmp.ne.s32.totalorder %s1197_s0, %s978_s21  ;;  %p982_p9 = scmp.lt.u32.totalorder %s978_s21, %s1197_s0 }
  0x19   :  { %p984_p10 = pnand %p982_p9, %p979_p8 }
  0x1b   :  { %987 = shalt.err (!%p984_p10)
}
  0x1c   :  { %s988_s1 = scalar_lea.vmem %s23_s16, 128  ;;  %p993_p12 = scmp.lt.s32.totalorder %s23_s16, %s23_s16 }
  0x1d   :  { %p989_p11 = scmp.ne.s32.totalorder %s23_s16, %s988_s1  ;;  %p994_p13 = scmp.lt.s32.totalorder %s988_s1, %s988_s1 }
  0x1f   :  { %p995_p0 = por %p994_p13, %p993_p12 }
  0x21   :  { %p996_p1 = pnand %p995_p0, %p989_p11 }
  0x23   :  { %999 = shalt.err (!%p996_p1)
}
  0x24   :  { %25 = dma.hbm_to_vmem [thread:$0]  %s1197_s0, 128, %s23_s16, [#allocation3]  }
  0x25   :  { %s1000_s30 = scalar_lea.hbm %s1200_s3, 4096 }
  0x26   :  { %p1001_p2 = scmp.ne.s32.totalorder %s1200_s3, %s1000_s30  ;;  %p1004_p3 = scmp.lt.u32.totalorder %s1000_s30, %s1200_s3 }
  0x28   :  { %p1006_p4 = pnand %p1004_p3, %p1001_p2 }
  0x2a   :  { %1009 = shalt.err (!%p1006_p4)
}
  0x2b   :  { %s1010_s12 = scalar_lea.vmem %s46_s18, 4096  ;;  %p1015_p6 = scmp.lt.s32.totalorder %s46_s18, %s46_s18 }
  0x2c   :  { %p1011_p5 = scmp.ne.s32.totalorder %s46_s18, %s1010_s12  ;;  %p1016_p7 = scmp.lt.s32.totalorder %s1010_s12, %s1010_s12 }
  0x2e   :  { %p1017_p8 = por %p1016_p7, %p1015_p6 }
  0x30   :  { %p1018_p9 = pnand %p1017_p8, %p1011_p5 }
  0x32   :  { %1021 = shalt.err (!%p1018_p9)
}
  0x33   :  { %s1079_s0 = smov 64   ;;  %s1080_s13 = smov 4  }
  0x34   :  { %51 = dma.hbm_to_vmem [thread:$0]  %s1200_s3, 4096, %s46_s18, [#allocation6], %s1079_s0, %s1079_s0, %s1080_s13  }
  0x35   :  { %s1081_s16 = smov [#allocation8]   ;;  %s1022_s21 = scalar_lea.hbm %s1202_s5, 1024 }
  0x36   :  { %s59_s17 = sshll.u32 %s1081_s16, 4  ;;  %p1023_p10 = scmp.ne.s32.totalorder %s1202_s5, %s1022_s21  ;;  %s60_s17 = int_to_ptr.vmem [resolvable:$true] %s59_s17 }
  0x37   :  { %p1026_p11 = scmp.lt.u32.totalorder %s1022_s21, %s1202_s5 }
  0x39   :  { %p1028_p12 = pnand %p1026_p11, %p1023_p10 }
  0x3b   :  { %1031 = shalt.err (!%p1028_p12)
}
  0x3c   :  { %s1032_s1 = scalar_lea.vmem %s60_s17, 1024  ;;  %p1037_p0 = scmp.lt.s32.totalorder %s60_s17, %s60_s17 }
  0x3d   :  { %p1033_p13 = scmp.ne.s32.totalorder %s60_s17, %s1032_s1  ;;  %p1038_p1 = scmp.lt.s32.totalorder %s1032_s1, %s1032_s1 }
  0x3f   :  { %p1039_p2 = por %p1038_p1, %p1037_p0 }
  0x41   :  { %p1040_p3 = pnand %p1039_p2, %p1033_p13 }
  0x43   :  { %1043 = shalt.err (!%p1040_p3)
}
  0x44   :  { %65 = dma.hbm_to_vmem [thread:$0]  %s1202_s5, 1024, %s60_s17, [#allocation9], %s1079_s0, %s1079_s0, %s1080_s13  }
  0x45   :  { %1066 = dma.done.wait [#allocation3], 128  }
  0x46   :  { %1067 = vsyncadd [#allocation3], 4294967168 }
  0x47   :  { %1068 = dma.done.wait [#allocation6], 5120  }
  0x48   :  { %1069 = vsyncadd [#allocation6], 4294962176 }
  0x49   :  { %1070 = dma.done.wait [#allocation9], 1024  }
  0x4a   :  { %1071 = vsyncadd [#allocation9], 4294966272  ;;  %v1082_v0 = vmov 0   ;;  %v900_v1 = vld [vmem:[#allocation5 + $0x4] ss:$16 sps:$4 sm:$0xff]   ;;  %v81_v5 = vld [vmem:[#allocation2] sm:$0xff]  ;;  %v93_v44 = vlaneseq }
  0x4b   :  { %189 = vmatprep.mubr.bf16.mxu1 %v1082_v0  ;;  %v902_v2 = vld [vmem:[#allocation5] ss:$16 sps:$4 sm:$0xff]   ;;  %157 = vmatprep.subr.bf16.mxu1 %v900_v1  ;;  %v903_v3 = vld [vmem:[#allocation5 + $0x24] ss:$16 sps:$4 sm:$0xff]   ;;  %v908_v6 = vld [vmem:[#allocation5 + $0xc] ss:$16 sps:$4 sm:$0xff]   ;;  %v82_v8 = vpack.c.bf16 %v81_v5, %v81_v5 }
  0x4c   :  { %v905_v4 = vld [vmem:[#allocation5 + $0x20] ss:$16 sps:$4 sm:$0xff]   ;;  %158 = vmatpush1.bf16.msra.mxu1 %v902_v2  ;;  %v906_v7 = vld [vmem:[#allocation5 + $0x8] ss:$16 sps:$4 sm:$0xff]   ;;  %v911_v9 = vld [vmem:[#allocation5 + $0x2c] ss:$16 sps:$4 sm:$0xff]  }
  0x4d   :  { %159 = vmatprep.subr.bf16.mxu1 %v903_v3  ;;  %v912_v10 = vld [vmem:[#allocation7 + $0x40] sm:$0xff]   ;;  %vm153_vm0 = vcmask 261120   ;;  %v914_v12 = vld [vmem:[#allocation7 + $0x48] sm:$0xff]   ;;  %v916_v14 = vld [vmem:[#allocation7 + $0x50] sm:$0xff]   ;;  %v1083_v43 = vmov 0.0   ;;  %v94_v45 = vshrl.u32 %v93_v44, 7 }
  0x4e   :  { %v913_v11 = vld [vmem:[#allocation7] sm:$0xff]   ;;  %815 = vmatprep.subr.bf16.mxu0 %v912_v10  ;;  %v915_v13 = vld [vmem:[#allocation7 + $0x8] sm:$0xff]   ;;  %v918_v17 = vld [vmem:[#allocation7 + $0x10] sm:$0xff]   ;;  %vm1084_vm1 = vmmov 0   ;;  %vm744_vm2 = vcmask 64512  }
  0x4f   :  { %816 = vmatpush3.bf16.msra.mxu0 %v913_v11  ;;  %v909_v15 = vld [vmem:[#allocation5 + $0x28] ss:$16 sps:$4 sm:$0xff]   ;;  %v917_v16 = vld [vmem:[#allocation7 + $0xc0] sm:$0xff]   ;;  %v925_v24 = vld [vmem:[#allocation7 + $0xd0] sm:$0xff]   ;;  %v95_v46 = vsub.s32 0, %v94_v45  ;;  %v99_v48 = vsub.s32 1, %v94_v45 }
  0x50   :  { %160 = vmatpush1.bf16.msra.mxu1 %v905_v4  ;;  %817 = vmatprep.subr.bf16.mxu0 %v914_v12  ;;  %v920_v18 = vld [vmem:[#allocation7 + $0x58] sm:$0xff]   ;;  %v919_v19 = vld [vmem:[#allocation7 + $0x80] sm:$0xff]   ;;  %v921_v20 = vld [vmem:[#allocation7 + $0xc8] sm:$0xff]   ;;  %v103_v54 = vsub.s32 2, %v94_v45  ;;  %v107_v57 = vsub.s32 3, %v94_v45 }
  0x51   :  { %198 = vmatprep.subr.bf16.mxu1 %v908_v6  ;;  %v922_v21 = vld [vmem:[#allocation7 + $0x18] sm:$0xff]   ;;  %v924_v22 = vld [vmem:[#allocation7 + $0x60] sm:$0xff]   ;;  %v923_v23 = vld [vmem:[#allocation7 + $0x88] sm:$0xff]  }
  0x52   :  { %v926_v25 = vld [vmem:[#allocation7 + $0x20] sm:$0xff]   ;;  %v928_v26 = vld [vmem:[#allocation7 + $0x68] sm:$0xff]   ;;  %v927_v27 = vld [vmem:[#allocation7 + $0x90] sm:$0xff]  }
  0x53   :  { %771 = vmatmul.mubr.msk.bf16.vlgmr.msra.gmra.mrb[0].mxu1 %vm153_vm0, %v82_v8  ;;  %818 = vmatpush3.bf16.msra.mxu0 %v915_v13  ;;  %v929_v28 = vld [vmem:[#allocation7 + $0xd8] sm:$0xff]   ;;  %v930_v29 = vld [vmem:[#allocation7 + $0x28] sm:$0xff]   ;;  %v932_v31 = vld [vmem:[#allocation7 + $0x70] sm:$0xff]  }
  0x54   :  { %199 = vmatpush1.bf16.msra.mxu1 %v906_v7  ;;  %230 = vmatprep.mubr.bf16.mxu1 %v1082_v0  ;;  %v931_v30 = vld [vmem:[#allocation7 + $0x98] sm:$0xff]   ;;  %v933_v32 = vld [vmem:[#allocation7 + $0xe0] sm:$0xff]   ;;  %v934_v33 = vld [vmem:[#allocation7 + $0x30] sm:$0xff]  }
  0x55   :  { %200 = vmatprep.subr.bf16.mxu1 %v911_v9  ;;  %819 = vmatprep.subr.bf16.mxu0 %v916_v14  ;;  %v935_v34 = vld [vmem:[#allocation7 + $0xa0] sm:$0xff]   ;;  %v936_v35 = vld [vmem:[#allocation7 + $0x78] sm:$0xff]   ;;  %v937_v36 = vld [vmem:[#allocation7 + $0xe8] sm:$0xff]  }
  0x56   :  { %v938_v37 = vld [vmem:[#allocation7 + $0x38] sm:$0xff]   ;;  %v939_v38 = vld [vmem:[#allocation7 + $0xa8] sm:$0xff]   ;;  %v940_v39 = vld [vmem:[#allocation7 + $0xf0] sm:$0xff]  }
  0x57   :  { %820 = vmatpush3.bf16.msra.mxu0 %v918_v17  ;;  %v941_v40 = vld [vmem:[#allocation7 + $0xb0] sm:$0xff]   ;;  %v942_v41 = vld [vmem:[#allocation7 + $0xf8] sm:$0xff]   ;;  %v944_v0 = vld [vmem:[#allocation8] sm:$0xff]  }
  0x58   :  { %201 = vmatpush1.bf16.msra.mxu1 %v909_v15  ;;  %821 = vmatprep.subr.bf16.mxu0 %v920_v18  ;;  %v943_v42 = vld [vmem:[#allocation7 + $0xb8] sm:$0xff]   ;;  %v945_v7 = vld [vmem:[#allocation8 + $0x8] sm:$0xff]   ;;  %v946_v12 = vld [vmem:[#allocation8 + $0x10] sm:$0xff]  }
  0x59   :  { %837 = vmatprep.subr.bf16.mxu1 %v917_v16  ;;  %v91_v47 = vld [vmem:[%s1199_s2] sm:$0xf]  ;;  %v948_v15 = vld [vmem:[#allocation8 + $0x20] sm:$0xff]   ;;  %v949_v16 = vld [vmem:[#allocation8 + $0x28] sm:$0xff]  }
  0x5a   :  { %v96_v49 = vrot.slane %v91_v47, %v95_v46  ;;  %v100_v50 = vrot.slane %v91_v47, %v99_v48  ;;  %v104_v61 = vrot.slane %v91_v47, %v103_v54  ;;  %v108_v63 = vrot.slane %v91_v47, %v107_v57  ;;  %v947_v14 = vld [vmem:[#allocation8 + $0x18] sm:$0xff]   ;;  %v950_v17 = vld [vmem:[#allocation8 + $0x30] sm:$0xff]  }
  0x5b   :  { %772 = vmatmul.mubr.msk.bf16.vlgmr.msra.gmra.mrb[4].mxu1 %vm153_vm0, %v82_v8  ;;  %822 = vmatpush3.bf16.msra.mxu0 %v922_v21  ;;  %v951_v18 = vld [vmem:[#allocation8 + $0x38] sm:$0xff]  }
  0x5c   :  { %838 = vmatpush3.bf16.msra.mxu1 %v919_v19  ;;  %823 = vmatprep.subr.bf16.mxu0 %v924_v22 }
  0x5d   :  { %839 = vmatprep.subr.bf16.mxu1 %v921_v20 }
  0x5f   :  { %824 = vmatpush3.bf16.msra.mxu0 %v926_v25 }
  0x60   :  { %840 = vmatpush3.bf16.msra.mxu1 %v923_v23  ;;  %825 = vmatprep.subr.bf16.mxu0 %v928_v26 }
  0x61   :  { %841 = vmatprep.subr.bf16.mxu1 %v925_v24  ;;  %v773_v24 = vld [vmem:[%s1201_s4] ss:$0 sm:$0xff]  ;;  %s1085_s4 = smov [#allocation10]  }
  0x62   :  { %s752_s30 = sshll.u32 %s1085_s4, 4  ;;  %s753_s30 = int_to_ptr.vmem [resolvable:$true] %s752_s30 }
  0x63   :  { %826 = vmatpush3.bf16.msra.mxu0 %v930_v29  ;;  %p1049_p5 = scmp.lt.s32.totalorder %s753_s30, %s753_s30 }
  0x64   :  { %842 = vmatpush3.bf16.msra.mxu1 %v927_v27  ;;  %827 = vmatprep.subr.bf16.mxu0 %v932_v31 }
  0x65   :  { %843 = vmatprep.subr.bf16.mxu1 %v929_v28 }
  0x67   :  { %828 = vmatpush3.bf16.msra.mxu0 %v934_v33 }
  0x68   :  { %844 = vmatpush3.bf16.msra.mxu1 %v931_v30  ;;  %829 = vmatprep.subr.bf16.mxu0 %v936_v35 }
  0x69   :  { %845 = vmatprep.subr.bf16.mxu1 %v933_v32 }
  0x6b   :  { %830 = vmatpush3.bf16.msra.mxu0 %v938_v37 }
  0x6c   :  { %846 = vmatpush3.bf16.msra.mxu1 %v935_v34  ;;  %868 = vmatprep.subr.bf16.mxu0 %v1083_v43  ;;  %v806_v34 = vld [vmem:[%s1203_s6] ss:$0 sm:$0xff]  ;;  %s1044_s6 = scalar_lea.vmem %s753_s30, 128 }
  0x6d   :  { %847 = vmatprep.subr.bf16.mxu1 %v937_v36  ;;  %p1045_p4 = scmp.ne.s32.totalorder %s753_s30, %s1044_s6  ;;  %p1050_p6 = scmp.lt.s32.totalorder %s1044_s6, %s1044_s6 }
  0x6f   :  { %p1051_p7 = por %p1050_p6, %p1049_p5 }
  0x70   :  { %848 = vmatpush3.bf16.msra.mxu1 %v939_v38 }
  0x71   :  { %849 = vmatprep.subr.bf16.mxu1 %v940_v39  ;;  %p1052_p8 = pnand %p1051_p7, %p1045_p4 }
  0x74   :  { %850 = vmatpush3.bf16.msra.mxu1 %v941_v40 }
  0x75   :  { %851 = vmatprep.subr.bf16.mxu1 %v942_v41 }
  0x78   :  { %852 = vmatpush3.bf16.msra.mxu1 %v943_v42 }
 0x126   :  { %v191_v51 = vpop.f32.mrb[0].mxu1 }
 0x127   :  { %v192_v52 = vadd.f32 %v191_v51, %v96_v49  ;;  %v193_v53 = vpop.f32.mrb[1].mxu1 }
 0x128   :  { %v194_v55 = vadd.f32 %v193_v53, %v100_v50  ;;  %v195_v56 = vpop.f32.mrb[2].mxu1 }
 0x129   :  { %v239_v58 = vmax.f32 %v192_v52, 0.0  ;;  %v196_v59 = vpop.f32.mrb[3].mxu1 }
 0x12a   :  { %v240_v60 = vmax.f32 %v194_v55, 0.0 }
 0x12b   :  { %v243_v1 = vpack.c.bf16 %v239_v58, %v239_v58 }
 0x12c   :  { %v244_v62 = vpack.c.bf16 %v240_v60, %v240_v60 }
 0x12e   :  { %v232_v2 = vpop.f32.mrb[4].mxu1  ;;  %542 = vmatprep.mubr.bf16.mxu0 %v244_v62 }
 0x12f   :  { %v233_v3 = vadd.f32 %v232_v2, %v104_v61  ;;  %v234_v4 = vpop.f32.mrb[5].mxu1  ;;  %543 = vmatmul.mubr.bf16.vlgmr.msra.gmra.mrb[0].mxu0 %v243_v1 }
 0x130   :  { %v235_v5 = vadd.f32 %v234_v4, %v108_v63  ;;  %v236_v6 = vpop.f32.mrb[6].mxu1  ;;  %869 = vmatpush3.bf16.msra.mxu0 %v944_v0  ;;  %884 = vmatprep.mubr.msk.bf16.mxu0 %vm1084_vm1, %v1083_v43 }
 0x131   :  { %v241_v8 = vmax.f32 %v233_v3, 0.0  ;;  %v237_v9 = vpop.f32.mrb[7].mxu1  ;;  %870 = vmatprep.subr.bf16.mxu0 %v1083_v43 }
 0x132   :  { %v242_v10 = vmax.f32 %v235_v5, 0.0 }
 0x133   :  { %v245_v13 = vpack.c.bf16 %v241_v8, %v241_v8 }
 0x134   :  { %v246_v11 = vpack.c.bf16 %v242_v10, %v242_v10  ;;  %871 = vmatpush3.bf16.msra.mxu0 %v945_v7 }
 0x135   :  { %872 = vmatprep.subr.bf16.mxu0 %v1083_v43 }
 0x136   :  { %582 = vmatprep.mubr.bf16.mxu1 %v246_v11 }
 0x137   :  { %583 = vmatmul.mubr.bf16.vlgmr.msra.gmra.mrb[8].mxu1 %v245_v13 }
 0x138   :  { %873 = vmatpush3.bf16.msra.mxu0 %v946_v12 }
 0x139   :  { %874 = vmatprep.subr.bf16.mxu0 %v1083_v43 }
 0x13c   :  { %875 = vmatpush3.bf16.msra.mxu0 %v947_v14 }
 0x13d   :  { %876 = vmatprep.subr.bf16.mxu0 %v1083_v43 }
 0x140   :  { %877 = vmatpush3.bf16.msra.mxu0 %v948_v15 }
 0x141   :  { %878 = vmatprep.subr.bf16.mxu0 %v1083_v43 }
 0x144   :  { %879 = vmatpush3.bf16.msra.mxu0 %v949_v16 }
 0x145   :  { %880 = vmatprep.subr.bf16.mxu0 %v1083_v43 }
 0x148   :  { %881 = vmatpush3.bf16.msra.mxu0 %v950_v17 }
 0x149   :  { %882 = vmatprep.subr.bf16.mxu0 %v1083_v43 }
 0x14c   :  { %883 = vmatpush3.bf16.msra.mxu0 %v951_v18 }
 0x202   :  { %v831_v19 = vpop.f32.mrb[0].mxu0 }
 0x203   :  { %v832_v20 = vpop.f32.mrb[1].mxu0 }
 0x204   :  { %v833_v21 = vadd.f32 %v832_v20, %v831_v19  ;;  %v834_v22 = vpop.f32.mrb[2].mxu0 }
 0x205   :  { %v835_v23 = vpop.f32.mrb[3].mxu0 }
 0x206   :  { %v545_v27 = vadd.f32 %v833_v21, %v773_v24 }
 0x20a   :  { %v853_v25 = vpop.f32.mrb[8].mxu1 }
 0x20b   :  { %v854_v26 = vpop.f32.mrb[9].mxu1 }
 0x20c   :  { %v855_v28 = vadd.f32 %v854_v26, %v853_v25  ;;  %v856_v29 = vpop.f32.mrb[10].mxu1 }
 0x20d   :  { %v857_v30 = vpop.f32.mrb[11].mxu1 }
 0x20e   :  { %v585_v31 = vadd.f32 %v855_v28, %v545_v27 }
 0x210   :  { %v590_v32 = vmax.f32 %v585_v31, 0.0 }
 0x212   :  { %v591_v33 = vpack.c.bf16 %v590_v32, %v590_v32 }
 0x214   :  { %885 = vmatmul.mubr.bf16.vlgmr.msra.gmra.mrb[4].mxu0 %v591_v33 }
 0x2e7   :  { %v697_v35 = vpop.f32.mrb[4].mxu0 }
 0x2e8   :  { %v698_v36 = vadd.f32 %v806_v34, %v697_v35  ;;  %v886_v37 = vpop.f32.mrb[5].mxu0 }
 0x2e9   :  { %v700_v38 = vpop.f32.mrb[6].mxu0 }
 0x2ea   :  { %703 = vmax.xlane.f32.xlu0 %v698_v36  ;;  %v887_v39 = vpop.f32.mrb[7].mxu0 }
 0x377   :  { %v704_v40 = vpop.xlane.xlu0 %703 }
 0x378   :  { %v705_v41 = vsub.f32 %v698_v36, %v704_v40 }
 0x37a   :  { %v706_v42 = vmul.f32 1.442695, %v705_v41 }
 0x37c   :  { %952 = vpow2.f32 %v706_v42 }
 0x386   :  { %v953_v43 = vpop.eup %952 }
 0x387   :  { %708 = vadd.xlane.f32.xlu0 %v953_v43 }
 0x414   :  { %v709_v44 = vpop.xlane.xlu0 %708 }
 0x415   :  { %954 = vrcp.f32 %v709_v44 }
 0x41f   :  { %v955_v45 = vpop.eup %954 }
 0x420   :  { %v711_v46 = vmul.f32 %v955_v45, %v953_v43 }
 0x422   :  { %712 = vxpose.xlu1.b32.start.end [1/1] (short) (narrow) %v711_v46, 8 }
 0x4a2   :  { %v728_v47 = vpop.trf.xlu1 }
 0x4a3   :  { %745 = vst.msk [vmem:[#allocation10] sm:$0xff] %vm744_vm2, %v728_v47 }
 0x4a4   :  { %1055 = shalt.err (!%p1052_p8)
}
 0x4a5   :  { %s1056_s10 = scalar_lea.hbm %s1204_s7, 128 }
 0x4a6   :  { %p1057_p9 = scmp.ne.s32.totalorder %s1204_s7, %s1056_s10  ;;  %p1060_p10 = scmp.lt.u32.totalorder %s1056_s10, %s1204_s7 }
 0x4a8   :  { %p1062_p11 = pnand %p1060_p10, %p1057_p9 }
 0x4aa   :  { %1065 = shalt.err (!%p1062_p11)
}
 0x4ab   :  { %755 = dma.vmem_to_hbm [thread:$0]  %s753_s30, 128, %s1204_s7, [#allocation4]  }
 0x4ac   :  { %1072 = dma.done.wait [#allocation4], 128  }
 0x4ad   :  { %1073 = vsyncadd [#allocation4], 4294967168 }
 0x4ae   :  { %759 = vsyncpa [#allocation3], 1 }
 0x4af   :  { %760 = vsyncpa [#allocation6], 1 }
 0x4b0   :  { %761 = vsyncpa [#allocation9], 1 }
 0x4b1   :  { %762 = vsyncpa [#allocation4], 1 }

</bundles_post_ra>
